<compile_context>
chip_gen: v6e
topology: v6e:2x2x1
jax: 0.10.0
libtpu: 0.0.40
codegen_flags: <defaults>
</compile_context>

<pallas_src>
import numpy as np

import jax
import jax.numpy as jnp
from jax.experimental import pallas as pl
from jax.experimental.pallas import tpu as pltpu

# ------------------------------ configuration ------------------------------
B = 2        # batch
C = 32       # input channels of the feature map
H = W = 16   # spatial size
S = H * W    # flattened spatial length (lane axis)
KS = 7       # SpatialAttention conv kernel size


# ------------------------------- Pallas kernel ------------------------------
def _spatial_attention_kernel(x_ref, conv_ref, out_ref):
    """x_ref: (1, C, S) f32; conv_ref: (2S, S) bf16; out_ref: (1, 1, S) f32."""
    f32 = jnp.float32
    x = x_ref[...].astype(f32)                                # (1, C, S)

    # Channel pooling (kept in f32: exact mean/max, VPU/XLU work).
    avg_c = jnp.mean(x, axis=1)                               # (1, S)
    max_c = jnp.max(x, axis=1)                                # (1, S)

    # Fused padded 7x7 conv over [avg | max]: single bf16 matmul against the
    # stacked (2S, S) dense conv matrix, f32 accumulation on the MXU.
    pooled = jnp.concatenate([avg_c, max_c], axis=-1)         # (1, 2S)
    conv = jnp.dot(pooled.astype(jnp.bfloat16), conv_ref[...],
                   preferred_element_type=f32)                # (1, S)

    y = jax.nn.sigmoid(conv)                                  # (1, S), f32 EUP math
    out_ref[...] = y.reshape(1, 1, y.shape[-1]).astype(out_ref.dtype)


# ------------------------------ wrapper / glue -------------------------------
def _build_conv_matrix(kernel2d, height, width):
    """Dense (HW, HW) matrix [out, in] equivalent of a zero-padded KxK cross-correlation."""
    k = kernel2d.shape[0]
    pad = (k - 1) // 2
    m = np.zeros((height * width, height * width), dtype=np.float32)
    for oh in range(height):
        for ow in range(width):
            for kh in range(k):
                for kw in range(k):
                    ih, iw = oh + kh - pad, ow + kw - pad
                    if 0 <= ih < height and 0 <= iw < width:
                        m[oh * width + ow, ih * width + iw] += kernel2d[kh, kw]
    return m


def make_params(key):
    """Returns (conv_mat bf16 (2S, S) for the kernel, raw conv weight f32 (1,2,KS,KS) for the ref)."""
    weight = (0.05 * jax.random.normal(key, (1, 2, KS, KS))).astype(jnp.float32)
    w_np = np.asarray(weight)
    m_avg = _build_conv_matrix(w_np[0, 0], H, W)              # applies to the avg channel
    m_max = _build_conv_matrix(w_np[0, 1], H, W)              # applies to the max channel
    # Transposed for right-multiplication and stacked along the contraction axis.
    conv_mat = np.concatenate([m_avg.T, m_max.T], axis=0)     # (2S, S)
    return jnp.asarray(conv_mat, dtype=jnp.bfloat16), weight


def spatial_attention_forward(x_nchw, conv_mat):
    """x_nchw: (B, C, H, W) -> sigmoid(conv7x7([mean_c(x); max_c(x)])) of shape (B, 1, H, W)."""
    b, c, h, w = x_nchw.shape
    s = h * w
    x_seq = x_nchw.reshape(b, c, s).astype(jnp.float32)       # NCHW -> (B, C, S), no transpose

    out = pl.pallas_call(
        _spatial_attention_kernel,
        grid=(b,),
        in_specs=[
            pl.BlockSpec((1, c, s), lambda i: (i, 0, 0)),           # per-batch feature tile
            pl.BlockSpec(conv_mat.shape, lambda i: (0, 0)),         # resident conv matrix
        ],
        out_specs=pl.BlockSpec((1, 1, s), lambda i: (i, 0, 0)),
        out_shape=jax.ShapeDtypeStruct((b, 1, s), jnp.float32),
        compiler_params=pltpu.CompilerParams(
            dimension_semantics=("parallel",)),                     # batch across TCs on v7x
    )(x_seq, conv_mat)
    return out.reshape(b, 1, h, w)


# ------------------------------ numpy reference ------------------------------
def _reference_forward(x_nchw, weight):
    x = np.asarray(x_nchw, np.float64)
    wgt = np.asarray(weight, np.float64)                       # (1, 2, KS, KS)
    b, _, h, w = x.shape
    stacked = np.stack([x.mean(axis=1), x.max(axis=1)], axis=1)  # (B, 2, H, W)
    pad = (KS - 1) // 2
    padded = np.pad(stacked, ((0, 0), (0, 0), (pad, pad), (pad, pad)))
    out = np.zeros((b, 1, h, w), np.float64)
    for kh in range(KS):
        for kw in range(KS):
            out[:, 0] += (wgt[0, 0, kh, kw] * padded[:, 0, kh:kh + h, kw:kw + w]
                          + wgt[0, 1, kh, kw] * padded[:, 1, kh:kh + h, kw:kw + w])
    return 1.0 / (1.0 + np.exp(-out))


if __name__ == "__main__":
    key = jax.random.PRNGKey(0)
    k_x, k_w = jax.random.split(key)
    x = jax.random.normal(k_x, (B, C, H, W), jnp.float32)
    conv_mat, weight = make_params(k_w)

    out = spatial_attention_forward(x, conv_mat)
    out = jax.block_until_ready(out)

    assert out.shape == (B, 1, H, W) and out.dtype == jnp.float32
    ref = _reference_forward(x, weight)
    # bf16 matmul inputs with f32 accumulation -> loose tolerance.
    assert np.allclose(np.asarray(out), ref, atol=2e-2), "mismatch vs reference"
    print("KERNEL_OK")
</pallas_src>

<mosaic_0001>
module attributes {stable_mosaic.version = 11 : i64} {
  func.func @_spatial_attention_kernel(%arg0: i32, %arg1: memref<1x32x256xf32, #tpu.memory_space<vmem>>, %arg2: memref<512x256xbf16, #tpu.memory_space<vmem>>, %arg3: memref<1x1x256xf32, #tpu.memory_space<vmem>>) attributes {dimension_semantics = [#tpu.dimension_semantics<parallel>], iteration_bounds = array<i64: 2>, scalar_prefetch = 0 : i64, scratch_operands = 0 : i64, tpu.core_type = #tpu.core_type<tc>, window_params = [{transform_indices = @transform_0, window_bounds = array<i64: 1, 32, 256>}, {pipeline_mode = #tpu.pipeline_mode<synchronous>, transform_indices = @transform_1, window_bounds = array<i64: 512, 256>}, {transform_indices = @transform_2, window_bounds = array<i64: 1, 1, 256>}]} {
    %c0 = arith.constant 0 : index
    %c0_0 = arith.constant 0 : index
    %c0_1 = arith.constant 0 : index
    %0 = vector.load %arg1[%c0, %c0_0, %c0_1] : memref<1x32x256xf32, #tpu.memory_space<vmem>>, vector<1x32x256xf32>
    %cst = arith.constant dense<0.000000e+00> : vector<1x256xf32>
    %1 = vector.multi_reduction <add>, %0, %cst [1] : vector<1x32x256xf32> to vector<1x256xf32>
    %cst_2 = arith.constant 3.200000e+01 : f32
    %2 = vector.broadcast %cst_2 : f32 to vector<1x256xf32>
    %3 = arith.divf %1, %2 : vector<1x256xf32>
    %cst_3 = arith.constant dense<0xFF800000> : vector<1x256xf32>
    %4 = vector.multi_reduction <maximumf>, %0, %cst_3 [1] : vector<1x32x256xf32> to vector<1x256xf32>
    %5 = tpu.concatenate %3, %4 in 1 : vector<1x256xf32>, vector<1x256xf32> -> vector<1x512xf32>
    %6 = arith.truncf %5 : vector<1x512xf32> to vector<1x512xbf16>
    %c0_4 = arith.constant 0 : index
    %c0_5 = arith.constant 0 : index
    %7 = vector.load %arg2[%c0_4, %c0_5] : memref<512x256xbf16, #tpu.memory_space<vmem>>, vector<512x256xbf16>
    %cst_6 = arith.constant dense<0.000000e+00> : vector<1x256xf32>
    %8 = tpu.matmul %6, %7, %cst_6 {dimension_numbers = #tpu.dot_dimension_numbers<[1], [0], [0], [1], [0, 0, 1, 1], [], []>} : vector<1x512xbf16>, vector<512x256xbf16>, vector<1x256xf32> -> vector<1x256xf32>
    %9 = arith.negf %8 : vector<1x256xf32>
    %10 = math.exp %9 : vector<1x256xf32>
    %cst_7 = arith.constant 1.000000e+00 : f32
    %11 = vector.broadcast %cst_7 : f32 to vector<1x256xf32>
    %12 = arith.addf %11, %10 : vector<1x256xf32>
    %13 = arith.divf %11, %12 : vector<1x256xf32>
    %14 = vector.shape_cast %13 : vector<1x256xf32> to vector<1x1x256xf32>
    %c0_8 = arith.constant 0 : index
    %c0_9 = arith.constant 0 : index
    %c0_10 = arith.constant 0 : index
    %15 = vector.load %arg3[%c0_8, %c0_9, %c0_10] : memref<1x1x256xf32, #tpu.memory_space<vmem>>, vector<1x1x256xf32>
    tpu.vector_store %arg3[%c0_8, %c0_9, %c0_10], %14 {strides = array<i32>} : memref<1x1x256xf32, #tpu.memory_space<vmem>>, vector<1x1x256xf32>,
    return
  }
  func.func @transform_0(%arg0: i32) -> (i32, i32, i32) {
    %c0_i32 = arith.constant 0 : i32
    %c0_i32_0 = arith.constant 0 : i32
    %c0_i32_1 = arith.constant 0 : i32
    return %arg0, %c0_i32, %c0_i32_0 : i32, i32, i32
  }
  func.func @transform_1(%arg0: i32) -> (i32, i32) {
    %c0_i32 = arith.constant 0 : i32
    %c0_i32_0 = arith.constant 0 : i32
    %c0_i32_1 = arith.constant 0 : i32
    return %c0_i32, %c0_i32_0 : i32, i32
  }
  func.func @transform_2(%arg0: i32) -> (i32, i32, i32) {
    %c0_i32 = arith.constant 0 : i32
    %c0_i32_0 = arith.constant 0 : i32
    %c0_i32_1 = arith.constant 0 : i32
    return %arg0, %c0_i32, %c0_i32_0 : i32, i32, i32
  }
}

</mosaic_0001>

<bundles_post_ra>
// kernel: tpu_custom_call.1
= control target key start
LH: loop header
LB: loop body
LE: loop exit
PB: predicated region body
PF: predicated region fallthrough
CT: control target
= control target key end

     0   :  { %7 = vsyncpa [#allocation3], 0  ;;  %s1395_s0 = inlined_call_operand.hbm [shape: f32[2,32,256], index: 0, kind: input, shape index: {}]   ;;  %s1396_s1 = inlined_call_operand.hbm [shape: bf16[512,256], index: 1, kind: input, shape index: {}]   ;;  %s1397_s2 = inlined_call_operand.hbm [shape: f32[2,1,256], index: 2, kind: output, shape index: {}]  }
   0x1   :  { %9 = vsyncpa [#allocation3 + $0x1], 0 }
   0x2   :  { %10 = vsyncpa [#allocation6], 0 }
   0x3   :  { %11 = vsyncpa [#allocation4], 0 }
   0x4   :  { %13 = vsyncpa [#allocation4 + $0x1], 0  ;;  %s1221_s9 = smov 0   ;;  %s1223_s10 = smov 0  }
   0x5   :  { %s1225_s11 = smov 0   ;;  %s1227_s12 = smov 0  }
   0x6 LB: > { %s1242_s13 = sadd.s32 4294967295, %s1196_s12   ;;  %s824_s14 = sadd.s32 4294967294, %s1196_s12   ;;  %s1196_s12 = sphi %s1227_s12, %s1419_s12   ;;  %s1192_s11 = sphi %s1225_s11, %s1418_s11   ;;  %s1188_s10 = sphi %s1223_s10, %s1417_s10   ;;  %s1184_s9 = sphi %s1221_s9, %s1416_s9  }
   0x7   : > { %p39_p0 = scmp.ne.s32.totalorder %s1188_s10, %s1184_s9  ;;  %p1398_p1 = scmp.eq.s32.totalorder %s1242_s13, 0 }
   0x8   : > { %p90_p3 = scmp.eq.s32.totalorder %s824_s14, 1  ;;  %p825_p5 = scmp.ge.s32.totalorder %s1196_s12, 1 }
   0x9   : > { %p1251_p4 = por %p1398_p1, %p39_p0  ;;  %p97_p7 = scmp.lt.s32.totalorder %s1196_s12, 3 }
   0xa   : > { %p1256_p6 = por %p90_p3, %p39_p0  ;;  %s1198_s18 = smov [#allocation5]  }
   0xb   : > { %s1402_s15 = scalar_select %p1251_p4, 1, 0 }
   0xc   : > { %s1403_s16 = scalar_select %p1256_p6, 1, 0 }
   0xd   : > { %p1261_p8 = pnand %p825_p5, %p97_p7  ;;  %s109_s19 = sshll.u32 %s1198_s18, 4  ;;  %s110_s19 = int_to_ptr.vmem [resolvable:$true] %s109_s19 }
   0xe   : > { %s1275_s21 = sadd.s32 1, %s1196_s12   ;;  %s26_s22 = sadd.s32 1, %s1192_s11 }
   0xf   : > { %s1404_s17 = scalar_select %p1261_p8, 1, 0 }
  0x10   : > { %p916_p9 = pneg %p1261_p8  ;;  %s23_s23 = ssub.s32 %s1196_s12, %s1275_s21 }
  0x11   : > { %s1085_s24 = scalar_lea.vmem %s110_s19, 8192  ;;  %p1093_p5 = scmp.lt.s32.totalorder %s110_s19, %s110_s19 }
  0x12   : > { %p1270_p11 = pnand %p916_p9, %p1398_p1  ;;  %p1086_p13 = scmp.ne.s32.totalorder %s110_s19, %s1085_s24 }
  0x13   : > { %p1094_p7 = scmp.lt.s32.totalorder %s1085_s24, %s1085_s24 }
  0x14   : > { %p1076_p12 = pneg %p1270_p11 }
  0x15   : > { %p1095_p10 = por %p1094_p7, %p1093_p5 }
  0x16   : > { %p1088_p0 = pnand %p1086_p13, %p1076_p12 }
  0x18   : > { %p1089_p3 = pneg %p1088_p0 }
  0x1a   : > { %p1096_p2 = pnand %p1095_p10, %p1089_p3 }
  0x1c   : > { %1099 = shalt.err (!%p1096_p2)
}
  0x1d   : > { %s1199_s25 = smov 128   ;;  %s1200_s26 = smov 8  }
  0x1e   : > { %919 = dma.hbm_to_vmem [thread:$0]  (!%p1270_p11), %s1396_s1, 8192, %s110_s19, [#allocation6], %s1199_s25, %s1199_s25, %s1200_s26  }
  0x1f   : > { %p24_p9 = scmp.eq.s32.totalorder %s23_s23, 0  ;;  %p33_p12 = scmp.ne.s32.totalorder %s1192_s11, %s1188_s10 }
  0x20   : > { %p34_p10 = scmp.eq.s32.totalorder %s1196_s12, 0  ;;  %p929_p2 = scmp.lt.s32.totalorder %s1196_s12, 2 }
  0x21   : > { %s1292_s29 = scalar_select %p24_p9, %s1192_s11, %s26_s22  }
  0x22   : > { %p35_p13 = por %p34_p10, %p33_p12  ;;  %p1406_p0 = scmp.eq.s32.totalorder %s1242_s13, 1 }
  0x23   : > { %s123_s3 = sand.u32 1, %s1192_s11   ;;  %s906_s4 = sshll.u32 %s1196_s12, 10 }
  0x24   : > { %p1296_p3 = por %p1406_p0, %p33_p12  ;;  %s828_s5 = sshll.u32 %s123_s3, 6 }
  0x25   : > { %s1305_s8 = scalar_lea.hbm %s1395_s0, %s906_s4  ;;  %s127_s14 = scalar_lea.vmem [#allocation2], %s828_s5 }
  0x26   : > { %s1407_s30 = scalar_select %p1296_p3, 1, 0 }
  0x27   : > { %s134_s18 = sshll.u32 %s127_s14, 4  ;;  %p1307_p11 = pnand %p929_p2, %p35_p13  ;;  %s1311_s18 = int_to_ptr.vmem [resolvable:$true] %s134_s18 }
  0x28   : > { %s1313_s20 = scalar_lea.sflag [#allocation3], %s123_s3  ;;  %s1100_s22 = scalar_lea.hbm %s1305_s8, 1024 }
  0x29   : > { %p1101_p5 = scmp.ne.s32.totalorder %s1305_s8, %s1100_s22  ;;  %p1102_p7 = pneg %p1307_p11 }
  0x2a   : > { %s1105_s25 = scalar_lea.hbm %s1395_s0, 2048  ;;  %p1106_p10 = scmp.lt.s32.totalorder %s1305_s8, %s1395_s0 }
  0x2b   : > { %p1103_p9 = pnand %p1102_p7, %p1101_p5  ;;  %p1107_p2 = scmp.lt.s32.totalorder %s1105_s25, %s1100_s22 }
  0x2d   : > { %p1104_p12 = pneg %p1103_p9  ;;  %p1108_p13 = por %p1107_p2, %p1106_p10 }
  0x2f   : > { %p1109_p0 = pnand %p1108_p13, %p1104_p12 }
  0x31   : > { %1112 = shalt.err (!%p1109_p0)
}
  0x32   : > { %s1113_s28 = scalar_lea.vmem %s1311_s18, 1024  ;;  %s1201_s3 = smov [#allocation2]  }
  0x33   : > { %p1114_p1 = scmp.ne.s32.totalorder %s1311_s18, %s1113_s28  ;;  %s1118_s4 = sshll.u32 %s1201_s3, 4  ;;  %s1119_s4 = int_to_ptr.vmem [resolvable:$false] %s1118_s4 }
  0x34   : > { %s1120_s5 = scalar_lea.vmem %s1119_s4, 2048  ;;  %p1121_p9 = scmp.lt.s32.totalorder %s1311_s18, %s1119_s4 }
  0x35   : > { %p1116_p6 = pnand %p1114_p1, %p1102_p7  ;;  %p1122_p3 = scmp.lt.s32.totalorder %s1120_s5, %s1113_s28 }
  0x37   : > { %p1117_p5 = pneg %p1116_p6  ;;  %p1123_p4 = por %p1122_p3, %p1121_p9 }
  0x39   : > { %p1124_p8 = pnand %p1123_p4, %p1117_p5 }
  0x3b   : > { %1127 = shalt.err (!%p1124_p8)
}
  0x3c   : > { %s1202_s6 = smov 256   ;;  %s1203_s7 = smov 16  }
  0x3d   : > { %923 = dma.hbm_to_vmem [thread:$0]  (!%p1307_p11), %s1305_s8, 1024, %s1311_s18, %s1313_s20, %s1202_s6, %s1202_s6, %s1203_s7  }
  0x3e   : > { %p1409_p1 = scmp.ne.s32.totalorder %s1404_s17, 0 }
  0x3f   : > { %s1337_s14 = sand.u32 (!%p1409_p1), 1, %s1188_s10   ;;  %p1410_p4 = scmp.ne.s32.totalorder (!%p1409_p1), %s1402_s15, 0 }
  0x40   : > { %146 = sbr.rel (%p1409_p1) target bundleno = 387 (0x183), region = 28  ;;  %s832_s22 = sshll.u32 (!%p1409_p1), %s1337_s14, 6 }
  0x41   : > { %s149_s23 = scalar_lea.sflag (!%p1409_p1), [#allocation3], %s1337_s14  ;;  %s1341_s24 = scalar_lea.vmem (!%p1409_p1), [#allocation2], %s832_s22 }
  0x45   : > { %1171 = dma.done.wait (%p1410_p4), %s149_s23, 1024  }
  0x46   : > { %1173 = vsyncadd (%p1410_p4), %s149_s23, 4294966272  ;;  %p1411_p6 = scmp.eq.s32.totalorder %s1242_s13, 0 }
  0x48   : > { %1175 = dma.done.wait (%p1411_p6), [#allocation6], 8192   ;;  %p1412_p8 = pmov %p1411_p6 }
  0x49   : > { %v970_v0 = vld [vmem:[#allocation5 + $0x74] ss:$8 sps:$4 sm:$0xff]   ;;  %v974_v2 = vld [vmem:[#allocation5 + $0x70] ss:$8 sps:$4 sm:$0xff]   ;;  %v976_v4 = vld [vmem:[#allocation5 + $0x64] ss:$8 sps:$4 sm:$0xff]  }
  0x4a   : > { %1177 = vsyncadd (%p1412_p8), [#allocation6], 4294959104  ;;  %v972_v1 = vld [vmem:[#allocation5 + $0x174] ss:$8 sps:$4 sm:$0xff]   ;;  %612 = vmatprep.subr.bf16.mxu0 %v970_v0  ;;  %v975_v3 = vld [vmem:[#allocation5 + $0x170] ss:$8 sps:$4 sm:$0xff]  }
  0x4b   : > { %653 = vmatprep.subr.bf16.mxu1 %v972_v1  ;;  %613 = vmatpush1.bf16.msra.mxu0 %v974_v2  ;;  %v978_v5 = vld [vmem:[#allocation5 + $0x164] ss:$8 sps:$4 sm:$0xff]   ;;  %v980_v6 = vld [vmem:[#allocation5 + $0x60] ss:$8 sps:$4 sm:$0xff]   ;;  %v982_v8 = vld [vmem:[#allocation5 + $0x54] ss:$8 sps:$4 sm:$0xff]  }
  0x4c   : > { %654 = vmatpush1.bf16.msra.mxu1 %v975_v3  ;;  %614 = vmatprep.subr.bf16.mxu0 %v976_v4  ;;  %v981_v7 = vld [vmem:[#allocation5 + $0x160] ss:$8 sps:$4 sm:$0xff]   ;;  %v984_v9 = vld [vmem:[#allocation5 + $0x154] ss:$8 sps:$4 sm:$0xff]   ;;  %v986_v10 = vld [vmem:[#allocation5 + $0x50] ss:$8 sps:$4 sm:$0xff]  }
  0x4d   : > { %655 = vmatprep.subr.bf16.mxu1 %v978_v5  ;;  %v987_v11 = vld [vmem:[#allocation5 + $0x150] ss:$8 sps:$4 sm:$0xff]   ;;  %v988_v12 = vld [vmem:[#allocation5 + $0x44] ss:$8 sps:$4 sm:$0xff]   ;;  %v992_v14 = vld [vmem:[#allocation5 + $0x40] ss:$8 sps:$4 sm:$0xff]  }
  0x4e   : > { %v990_v13 = vld [vmem:[#allocation5 + $0x144] ss:$8 sps:$4 sm:$0xff]   ;;  %v993_v15 = vld [vmem:[#allocation5 + $0x140] ss:$8 sps:$4 sm:$0xff]   ;;  %v994_v16 = vld [vmem:[#allocation5 + $0x34] ss:$8 sps:$4 sm:$0xff]  }
  0x4f   : > { %615 = vmatpush1.bf16.msra.mxu0 %v980_v6  ;;  %v996_v17 = vld [vmem:[#allocation5 + $0x134] ss:$8 sps:$4 sm:$0xff]   ;;  %v998_v18 = vld [vmem:[#allocation5 + $0x30] ss:$8 sps:$4 sm:$0xff]   ;;  %v1000_v20 = vld [vmem:[#allocation5 + $0x24] ss:$8 sps:$4 sm:$0xff]  }
  0x50   : > { %656 = vmatpush1.bf16.msra.mxu1 %v981_v7  ;;  %616 = vmatprep.subr.bf16.mxu0 %v982_v8  ;;  %v999_v19 = vld [vmem:[#allocation5 + $0x130] ss:$8 sps:$4 sm:$0xff]   ;;  %v1002_v21 = vld [vmem:[#allocation5 + $0x124] ss:$8 sps:$4 sm:$0xff]   ;;  %v1004_v22 = vld [vmem:[#allocation5 + $0x20] ss:$8 sps:$4 sm:$0xff]  }
  0x51   : > { %657 = vmatprep.subr.bf16.mxu1 %v984_v9  ;;  %v1005_v23 = vld [vmem:[#allocation5 + $0x120] ss:$8 sps:$4 sm:$0xff]   ;;  %v1006_v24 = vld [vmem:[#allocation5 + $0x14] ss:$8 sps:$4 sm:$0xff]   ;;  %v1010_v26 = vld [vmem:[#allocation5 + $0x10] ss:$8 sps:$4 sm:$0xff]  }
  0x52   : > { %v1008_v25 = vld [vmem:[#allocation5 + $0x114] ss:$8 sps:$4 sm:$0xff]   ;;  %v1011_v27 = vld [vmem:[#allocation5 + $0x110] ss:$8 sps:$4 sm:$0xff]   ;;  %v1012_v28 = vld [vmem:[#allocation5 + $0x4] ss:$8 sps:$4 sm:$0xff]  }
  0x53   : > { %617 = vmatpush1.bf16.msra.mxu0 %v986_v10  ;;  %v1014_v29 = vld [vmem:[#allocation5 + $0x104] ss:$8 sps:$4 sm:$0xff]   ;;  %v1016_v30 = vld [vmem:[#allocation5] ss:$8 sps:$4 sm:$0xff]   ;;  %v1018_v32 = vld [vmem:[#allocation5 + $0xf4] ss:$8 sps:$4 sm:$0xff]  }
  0x54   : > { %658 = vmatpush1.bf16.msra.mxu1 %v987_v11  ;;  %618 = vmatprep.subr.bf16.mxu0 %v988_v12  ;;  %v1017_v31 = vld [vmem:[#allocation5 + $0x100] ss:$8 sps:$4 sm:$0xff]   ;;  %v1020_v33 = vld [vmem:[#allocation5 + $0x1f4] ss:$8 sps:$4 sm:$0xff]   ;;  %v1022_v34 = vld [vmem:[#allocation5 + $0xf0] ss:$8 sps:$4 sm:$0xff]  }
  0x55   : > { %659 = vmatprep.subr.bf16.mxu1 %v990_v13  ;;  %v1023_v35 = vld [vmem:[#allocation5 + $0x1f0] ss:$8 sps:$4 sm:$0xff]   ;;  %v1024_v36 = vld [vmem:[#allocation5 + $0xe4] ss:$8 sps:$4 sm:$0xff]   ;;  %v1028_v38 = vld [vmem:[#allocation5 + $0xe0] ss:$8 sps:$4 sm:$0xff]  }
  0x56   : > { %v1026_v37 = vld [vmem:[#allocation5 + $0x1e4] ss:$8 sps:$4 sm:$0xff]   ;;  %v1029_v39 = vld [vmem:[#allocation5 + $0x1e0] ss:$8 sps:$4 sm:$0xff]   ;;  %v1030_v40 = vld [vmem:[#allocation5 + $0xd4] ss:$8 sps:$4 sm:$0xff]  }
  0x57   : > { %619 = vmatpush1.bf16.msra.mxu0 %v992_v14  ;;  %v1032_v41 = vld [vmem:[#allocation5 + $0x1d4] ss:$8 sps:$4 sm:$0xff]   ;;  %v1034_v42 = vld [vmem:[#allocation5 + $0xd0] ss:$8 sps:$4 sm:$0xff]   ;;  %v1036_v44 = vld [vmem:[#allocation5 + $0xc4] ss:$8 sps:$4 sm:$0xff]  }
  0x58   : > { %660 = vmatpush1.bf16.msra.mxu1 %v993_v15  ;;  %620 = vmatprep.subr.bf16.mxu0 %v994_v16  ;;  %v1035_v43 = vld [vmem:[#allocation5 + $0x1d0] ss:$8 sps:$4 sm:$0xff]   ;;  %v1038_v45 = vld [vmem:[#allocation5 + $0x1c4] ss:$8 sps:$4 sm:$0xff]   ;;  %v1040_v46 = vld [vmem:[#allocation5 + $0xc0] ss:$8 sps:$4 sm:$0xff]  }
  0x59   : > { %661 = vmatprep.subr.bf16.mxu1 %v996_v17  ;;  %v1041_v47 = vld [vmem:[#allocation5 + $0x1c0] ss:$8 sps:$4 sm:$0xff]   ;;  %v180_v49 = vld [vmem:[%s1341_s24 + $0x18] sm:$0xff]  ;;  %v179_v56 = vld [vmem:[%s1341_s24 + $0x10] sm:$0xff]  ;;  %s834_s15 = sshll.u32 %s1337_s14, 1  ;;  %s907_s17 = sshll.u32 %s1242_s13, 5 }
  0x5a   : > { %v178_v48 = vld [vmem:[%s1341_s24 + $0x8] sm:$0xff]  ;;  %v184_v51 = vld [vmem:[%s1341_s24 + $0x38] sm:$0xff]  ;;  %v177_v55 = vld [vmem:[%s1341_s24] sm:$0xff]  ;;  %s176_s8 = scalar_lea.vmem [#allocation7], %s834_s15  ;;  %s742_s25 = scalar_lea.hbm %s1397_s2, %s907_s17 }
  0x5b   : > { %621 = vmatpush1.bf16.msra.mxu0 %v998_v18  ;;  %v182_v50 = vld [vmem:[%s1341_s24 + $0x28] sm:$0xff]  ;;  %v194_v52 = vadd.f32 %v180_v49, %v178_v48  ;;  %v216_v54 = vmax.f32 %v180_v49, %v184_v51  ;;  %v181_v57 = vld [vmem:[%s1341_s24 + $0x20] sm:$0xff]  ;;  %v1042_v58 = vld [vmem:[#allocation5 + $0xb4] ss:$8 sps:$4 sm:$0xff]   ;;  %v185_v61 = vadd.f32 %v179_v56, %v177_v55  ;;  %s744_s18 = sshll.u32 %s176_s8, 4  ;;  %s730_s26 = scalar_lea.sflag [#allocation4], %s1337_s14  ;;  %s745_s18 = int_to_ptr.vmem [resolvable:$true] %s744_s18 }
  0x5c   : > { %662 = vmatpush1.bf16.msra.mxu1 %v999_v19  ;;  %622 = vmatprep.subr.bf16.mxu0 %v1000_v20  ;;  %v215_v53 = vmax.f32 %v178_v48, %v182_v50  ;;  %v1044_v59 = vld [vmem:[#allocation5 + $0x1b4] ss:$8 sps:$4 sm:$0xff]   ;;  %v206_v62 = vmax.f32 %v177_v55, %v181_v57  ;;  %v1046_v3 = vld [vmem:[#allocation5 + $0xb0] ss:$8 sps:$4 sm:$0xff]   ;;  %v1048_v8 = vld [vmem:[#allocation5 + $0xa4] ss:$8 sps:$4 sm:$0xff]  }
  0x5d   : > { %663 = vmatprep.subr.bf16.mxu1 %v1002_v21  ;;  %v183_v60 = vld [vmem:[%s1341_s24 + $0x30] sm:$0xff]  ;;  %v195_v63 = vadd.f32 %v194_v52, %v182_v50  ;;  %v186_v2 = vadd.f32 %v185_v61, %v181_v57  ;;  %v1050_v9 = vld [vmem:[#allocation5 + $0x1a4] ss:$8 sps:$4 sm:$0xff]   ;;  %v1052_v15 = vld [vmem:[#allocation5 + $0xa0] ss:$8 sps:$4 sm:$0xff]   ;;  %s1128_s27 = scalar_lea.vmem %s745_s18, 32 }
  0x5e   : > { %v217_v0 = vmax.f32 %v215_v53, %v216_v54  ;;  %v207_v1 = vmax.f32 %v179_v56, %v183_v60  ;;  %v1047_v4 = vld [vmem:[#allocation5 + $0x1b0] ss:$8 sps:$4 sm:$0xff]   ;;  %v1053_v16 = vld [vmem:[#allocation5 + $0x1a0] ss:$8 sps:$4 sm:$0xff]   ;;  %v1054_v20 = vld [vmem:[#allocation5 + $0x94] ss:$8 sps:$4 sm:$0xff]   ;;  %p1129_p3 = scmp.ne.s32.totalorder %s745_s18, %s1128_s27 }
  0x5f   : > { %623 = vmatpush1.bf16.msra.mxu0 %v1004_v22  ;;  %v196_v5 = vadd.f32 %v195_v63, %v184_v51  ;;  %v187_v10 = vadd.f32 %v186_v2, %v183_v60  ;;  %v1056_v21 = vld [vmem:[#allocation5 + $0x194] ss:$8 sps:$4 sm:$0xff]   ;;  %v1204_v2 = vmov 1966171168   ;;  %p1413_p11 = scmp.ne.s32.totalorder %s1407_s30, 0  ;;  %s1205_s28 = smov [#allocation7]  }
  0x60   : > { %664 = vmatpush1.bf16.msra.mxu1 %v1005_v23  ;;  %624 = vmatprep.subr.bf16.mxu0 %v1006_v24  ;;  %v218_v6 = vrot.slane %v217_v0, 4  ;;  %v208_v7 = vmax.f32 %v206_v62, %v207_v1  ;;  %s1132_s3 = sshll.u32 %s1205_s28, 4  ;;  %s1133_s3 = int_to_ptr.vmem [resolvable:$false] %s1132_s3 }
  0x61   : > { %665 = vmatprep.subr.bf16.mxu1 %v1008_v25  ;;  %v197_v11 = vrot.slane %v196_v5, 4  ;;  %v188_v14 = vrot.slane %v187_v10, 4  ;;  %p1130_p7 = pnand %p1129_p3, %p1413_p11  ;;  %s1134_s13 = scalar_lea.vmem %s1133_s3, 64 }
  0x62   : > { %v219_v12 = vmax.f32 %v217_v0, %v218_v6  ;;  %v209_v13 = vrot.slane %v208_v7, 4  ;;  %p1135_p10 = scmp.lt.s32.totalorder %s745_s18, %s1133_s3  ;;  %p1136_p2 = scmp.lt.s32.totalorder %s1134_s13, %s1128_s27 }
  0x63   : > { %625 = vmatpush1.bf16.msra.mxu0 %v1010_v26  ;;  %v198_v17 = vadd.f32 %v197_v11, %v196_v5  ;;  %v189_v22 = vadd.f32 %v188_v14, %v187_v10  ;;  %p1131_p12 = pneg %p1130_p7 }
  0x64   : > { %666 = vmatpush1.bf16.msra.mxu1 %v1011_v27  ;;  %626 = vmatprep.subr.bf16.mxu0 %v1012_v28  ;;  %v220_v18 = vrot.slane %v219_v12, 2  ;;  %v210_v19 = vmax.f32 %v208_v7, %v209_v13  ;;  %v1058_v27 = vld [vmem:[#allocation5 + $0x90] ss:$8 sps:$4 sm:$0xff]   ;;  %p1137_p13 = por %p1136_p2, %p1135_p10 }
  0x65   : > { %667 = vmatprep.subr.bf16.mxu1 %v1014_v29  ;;  %v199_v23 = vrot.slane %v198_v17, 2  ;;  %v190_v26 = vrot.slane %v189_v22, 2  ;;  %v1059_v28 = vld [vmem:[#allocation5 + $0x190] ss:$8 sps:$4 sm:$0xff]  }
  0x66   : > { %v221_v24 = vmax.f32 %v219_v12, %v220_v18  ;;  %v211_v25 = vrot.slane %v210_v19, 2  ;;  %p1138_p0 = pnand %p1137_p13, %p1131_p12 }
  0x67   : > { %627 = vmatpush1.bf16.msra.mxu0 %v1016_v30  ;;  %v200_v29 = vadd.f32 %v199_v23, %v198_v17 }
  0x68   : > { %668 = vmatpush1.bf16.msra.mxu1 %v1017_v31  ;;  %628 = vmatprep.subr.bf16.mxu0 %v1018_v32  ;;  %v222_v30 = vrot.slane %v221_v24, 1  ;;  %v212_v31 = vmax.f32 %v210_v19, %v211_v25  ;;  %v1060_v32 = vld [vmem:[#allocation5 + $0x84] ss:$8 sps:$4 sm:$0xff]  }
  0x69   : > { %669 = vmatprep.subr.bf16.mxu1 %v1020_v33  ;;  %v1062_v33 = vld [vmem:[#allocation5 + $0x184] ss:$8 sps:$4 sm:$0xff]  }
  0x6b   : > { %629 = vmatpush2.bf16.msra.mxu0 %v1022_v34  ;;  %v191_v34 = vadd.f32 %v190_v26, %v189_v22 }
  0x6c   : > { %670 = vmatpush2.bf16.msra.mxu1 %v1023_v35  ;;  %630 = vmatprep.subr.bf16.mxu0 %v1024_v36  ;;  %v201_v35 = vrot.slane %v200_v29, 1  ;;  %v223_v36 = vmax.f32 %v221_v24, %v222_v30 }
  0x6d   : > { %671 = vmatprep.subr.bf16.mxu1 %v1026_v37  ;;  %v213_v37 = vrot.slane %v212_v31, 1 }
  0x6f   : > { %631 = vmatpush2.bf16.msra.mxu0 %v1028_v38  ;;  %v192_v38 = vrot.slane %v191_v34, 1 }
  0x70   : > { %672 = vmatpush2.bf16.msra.mxu1 %v1029_v39  ;;  %632 = vmatprep.subr.bf16.mxu0 %v1030_v40  ;;  %v1064_v39 = vld [vmem:[#allocation5 + $0x80] ss:$8 sps:$4 sm:$0xff]  }
  0x71   : > { %673 = vmatprep.subr.bf16.mxu1 %v1032_v41  ;;  %v1065_v40 = vld [vmem:[#allocation5 + $0x180] ss:$8 sps:$4 sm:$0xff]   ;;  %v202_v41 = vadd.f32 %v201_v35, %v200_v29 }
  0x73   : > { %633 = vmatpush2.bf16.msra.mxu0 %v1034_v42  ;;  %v227_v42 = vpack.c.bf16 %v223_v36, %v223_v36 }
  0x74   : > { %674 = vmatpush2.bf16.msra.mxu1 %v1035_v43  ;;  %634 = vmatprep.subr.bf16.mxu0 %v1036_v44  ;;  %v214_v43 = vmax.f32 %v212_v31, %v213_v37  ;;  %v193_v44 = vadd.f32 %v192_v38, %v191_v34 }
  0x75   : > { %675 = vmatprep.subr.bf16.mxu1 %v1038_v45  ;;  %v205_v45 = vmul.f32 0.03125, %v202_v41  ;;  %685 = vmatprep.mubr.bf16.mxu1 %v227_v42 }
  0x77   : > { %635 = vmatpush2.bf16.msra.mxu0 %v1040_v46  ;;  %v204_v46 = vmul.f32 0.03125, %v193_v44  ;;  %v225_v48 = vpack.c.bf16 %v205_v45, %v205_v45 }
  0x78   : > { %676 = vmatpush2.bf16.msra.mxu1 %v1041_v47  ;;  %636 = vmatprep.subr.bf16.mxu0 %v1042_v58  ;;  %v226_v47 = vpack.c.bf16 %v214_v43, %v214_v43 }
  0x79   : > { %677 = vmatprep.subr.bf16.mxu1 %v1044_v59  ;;  %v224_v49 = vpack.c.bf16 %v204_v46, %v204_v46  ;;  %644 = vmatprep.mubr.bf16.mxu0 %v225_v48 }
  0x7b   : > { %637 = vmatpush2.bf16.msra.mxu0 %v1046_v3  ;;  %v710_v3 = vunpack.c.l.s4 %v1204_v2 }
  0x7c   : > { %678 = vmatpush2.bf16.msra.mxu1 %v1047_v4  ;;  %638 = vmatprep.subr.bf16.mxu0 %v1048_v8  ;;  %v712_v4 = vlaneseq }
  0x7d   : > { %679 = vmatprep.subr.bf16.mxu1 %v1050_v9  ;;  %v711_v5 = vunpack.c.0.s8 %v710_v3 }
  0x7e   : > { %v713_v6 = vshrl.u32 %v712_v4, 7  ;;  %vm726_vm0 = vcmp.lt.s32.totalorder %v712_v4, 256 }
  0x7f   : > { %639 = vmatpush2.bf16.msra.mxu0 %v1052_v15 }
  0x80   : > { %680 = vmatpush2.bf16.msra.mxu1 %v1053_v16  ;;  %640 = vmatprep.subr.bf16.mxu0 %v1054_v20  ;;  %v714_v8 = vsub.s32 %v711_v5, %v713_v6 }
  0x81   : > { %681 = vmatprep.subr.bf16.mxu1 %v1056_v21 }
  0x83   : > { %641 = vmatpush2.bf16.msra.mxu0 %v1058_v27 }
  0x84   : > { %682 = vmatpush2.bf16.msra.mxu1 %v1059_v28  ;;  %642 = vmatprep.subr.bf16.mxu0 %v1060_v32 }
  0x85   : > { %683 = vmatprep.subr.bf16.mxu1 %v1062_v33 }
  0x87   : > { %643 = vmatpush2.bf16.msra.mxu0 %v1064_v39 }
  0x88   : > { %684 = vmatpush2.bf16.msra.mxu1 %v1065_v40 }
  0x8a   : > { %645 = vmatmul.mubr.bf16.vlgmr.msra.gmra.mxu0 %v224_v49 }
  0x8b   : > { %686 = vmatmul.mubr.bf16.vlgmr.msra.gmra.mxu1 %v226_v47 }
 0x14a   : > { %v646_v50 = vpop.f32.mrf.mxu0 }
 0x14b   : > { %v687_v51 = vpop.f32.mrf.mxu1 }
 0x14c   : > { %v688_v52 = vadd.f32 %v687_v51, %v646_v50  ;;  %v648_v53 = vpop.f32.mrf.mxu0 }
 0x14d   : > { %v689_v54 = vpop.f32.mrf.mxu1 }
 0x14e   : > { %v899_v55 = vmul.f32 -1.442695, %v688_v52  ;;  %v690_v56 = vadd.f32 %v689_v54, %v648_v53  ;;  %v650_v57 = vpop.f32.mrf.mxu0 }
 0x14f   : > { %v691_v58 = vpop.f32.mrf.mxu1 }
 0x150   : > { %1066 = vpow2.f32 %v899_v55  ;;  %v900_v59 = vmul.f32 -1.442695, %v690_v56  ;;  %v651_v60 = vpop.f32.mrf.mxu0 }
 0x151   : > { %v692_v61 = vpop.f32.mrf.mxu1 }
 0x152   : > { %1068 = vpow2.f32 %v900_v59 }
 0x15d   : > { %v1067_v62 = vpop.eup %1066 }
 0x15e   : > { %v700_v63 = vadd.f32 1.0, %v1067_v62 }
 0x15f   : > { %v1069_v0 = vpop.eup %1068 }
 0x160   : > { %v701_v1 = vadd.f32 1.0, %v1069_v0  ;;  %1070 = vrcp.f32 %v700_v63 }
 0x162   : > { %1072 = vrcp.f32 %v701_v1 }
 0x16d   : > { %v1071_v7 = vpop.eup %1070 }
 0x16f   : > { %v1073_v9 = vpop.eup %1072 }
 0x170   : > { %v708_v10 = vcombine.low %v1071_v7, %v1073_v9 }
 0x172   : > { %v715_v11 = vrot.slane %v708_v10, %v714_v8 }
 0x174   : > { %v722_v12 = vrot.slane %v715_v11, %v714_v8 }
 0x176   : > { %728 = vst.msk [vmem:[%s176_s8] sm:$0x3] %vm726_vm0, %v722_v12 }
 0x177   : > { %1141 = shalt.err (!%p1138_p0)
}
 0x178   : > { %s1142_s4 = scalar_lea.hbm %s742_s25, 32  ;;  %s1146_s7 = scalar_lea.hbm %s1397_s2, 64 }
 0x179   : > { %p1143_p5 = scmp.ne.s32.totalorder %s742_s25, %s1142_s4  ;;  %p1147_p4 = scmp.lt.s32.totalorder %s742_s25, %s1397_s2 }
 0x17a   : > { %p1148_p6 = scmp.lt.s32.totalorder %s1146_s7, %s1142_s4 }
 0x17b   : > { %p1144_p9 = pnand %p1143_p5, %p1413_p11 }
 0x17c   : > { %p1149_p8 = por %p1148_p6, %p1147_p4 }
 0x17d   : > { %p1145_p1 = pneg %p1144_p9 }
 0x17f   : > { %p1150_p3 = pnand %p1149_p8, %p1145_p1 }
 0x181   : > { %1153 = shalt.err (!%p1150_p3)
}
 0x182   : > { %914 = dma.vmem_to_hbm [thread:$0]  (%p1413_p11), %s745_s18, 32, %s742_s25, %s730_s26  }
 0x183 PF: > { %s756_s23 = sand.u32 1, %s1184_s9   ;;  %p1414_p7 = scmp.ne.s32.totalorder %s1403_s16, 0 }
 0x184   : > { %p1415_p12 = scmp.ge.s32.totalorder %s1196_s12, 2  ;;  %s757_s24 = scalar_lea.sflag [#allocation4], %s756_s23 }
 0x186   : > { %p925_p10 = pnand %p1415_p12, %p1414_p7 }
 0x188   : > { %p926_p2 = pneg %p925_p10 }
 0x18a   : > { %1179 = dma.done.wait (%p926_p2), %s757_s24, 32  }
 0x18b   : > { %1181 = vsyncadd (%p926_p2), %s757_s24, 4294967264  ;;  %p16_p13 = scmp.ge.s32.totalorder %s1275_s21, 4   ;;  %s1416_s9 = smov %s1188_s10 }
 0x18c   : > { %s1417_s10 = smov %s1192_s11  ;;  %s1418_s11 = smov %s1292_s29 }
 0x18d   : > { %s1419_s12 = smov %s1275_s21  ;;  %18 = sbr.rel (!%p16_p13) target bundleno = 6 (0x6), region = 77 }
 0x192   :  { %762 = vsyncpa [#allocation3], 1 }
 0x193   :  { %764 = vsyncpa [#allocation3 + $0x1], 1 }
 0x194   :  { %765 = vsyncpa [#allocation6], 1 }
 0x195   :  { %766 = vsyncpa [#allocation4], 1 }
 0x196   :  { %768 = vsyncpa [#allocation4 + $0x1], 1 }

</bundles_post_ra>
